<compile_context>
chip_gen: v7x
topology: tpu7x:2x2x1
jax: 0.10.0
libtpu: 0.0.40
codegen_flags: <defaults>
</compile_context>

<pallas_src>
import jax
import jax.numpy as jnp
from jax.experimental import pallas as pl
from jax.experimental.pallas import tpu as pltpu

D_IN, D_HID, D_OUT = 128, 256, 512


def mlp_kernel(x_ref, w1_ref, b1_ref, w2_ref, b2_ref, o_ref):
    # In-kernel narrow cast of x (avoids a separate HBM pass in the wrapper).
    x = x_ref[...].astype(w1_ref.dtype)
    # linear1: (tb, 128) @ (128, 256) on the MXU, f32 accumulation + f32 bias.
    h = jnp.dot(x, w1_ref[...], preferred_element_type=jnp.float32)
    # Hidden staged as bf16 in-flow (no explicit f32 VMEM scratch).
    h = (h + b1_ref[...]).astype(w2_ref.dtype)
    # linear2: (tb, 256) @ (256, 512) on the MXU, f32 accumulation + f32 bias.
    y = jnp.dot(h, w2_ref[...], preferred_element_type=jnp.float32)
    o_ref[...] = (y + b2_ref[...]).astype(o_ref.dtype)


def test_model_forward(x, w1, b1, w2, b2, *, tb=None, out_dtype=None,
                       compute_dtype=jnp.bfloat16):
    """Forward pass of TestModel.  Weights are stored (in, out), i.e. already
    transposed relative to PyTorch's (out, in) nn.Linear weight."""
    B, d_in = x.shape
    assert d_in == D_IN
    assert w1.shape == (D_IN, D_HID) and w2.shape == (D_HID, D_OUT)
    out_dtype = out_dtype if out_dtype is not None else x.dtype

    # Narrow MXU operands for the weights; biases stay f32 (added to the f32
    # accumulator).  x itself is passed f32 and cast inside the kernel.
    w1c = w1.astype(compute_dtype)
    w2c = w2.astype(compute_dtype)
    b1c = b1.astype(jnp.float32).reshape(1, D_HID)
    b2c = b2.astype(jnp.float32).reshape(1, D_OUT)

    if tb is None:
        if B <= 512:
            tb = B           # gridless single block
        elif B >= 2048:
            tb = 1024        # big tiles, grid still >= 2 for megacore
        else:
            tb = 512

    if B <= tb:
        # Single-block, gridless call: whole problem fits trivially in VMEM.
        return pl.pallas_call(
            mlp_kernel,
            out_shape=jax.ShapeDtypeStruct((B, D_OUT), out_dtype),
        )(x, w1c, b1c, w2c, b2c)

    # Tiled path: large batch tiles streamed over a "parallel" grid, weights
    # and biases resident (constant index_map -> fetched once).
    assert tb % 16 == 0, "bf16 tiles want 16-sublane multiples"
    grid = (pl.cdiv(B, tb),)
    return pl.pallas_call(
        mlp_kernel,
        out_shape=jax.ShapeDtypeStruct((B, D_OUT), out_dtype),
        grid_spec=pltpu.PrefetchScalarGridSpec(
            num_scalar_prefetch=0,
            grid=grid,
            in_specs=[
                pl.BlockSpec((tb, D_IN), lambda i: (i, 0)),      # x tile (f32)
                pl.BlockSpec((D_IN, D_HID), lambda i: (0, 0)),   # W1 (resident)
                pl.BlockSpec((1, D_HID), lambda i: (0, 0)),      # b1 (resident)
                pl.BlockSpec((D_HID, D_OUT), lambda i: (0, 0)),  # W2 (resident)
                pl.BlockSpec((1, D_OUT), lambda i: (0, 0)),      # b2 (resident)
            ],
            out_specs=pl.BlockSpec((tb, D_OUT), lambda i: (i, 0)),
        ),
        compiler_params=pltpu.CompilerParams(
            dimension_semantics=("parallel",)),
    )(x, w1c, b1c, w2c, b2c)


def init_params(key):
    # Mimic nn.Linear default init: uniform(-1/sqrt(fan_in), +1/sqrt(fan_in)).
    k1, k2, k3, k4 = jax.random.split(key, 4)
    bound1 = 1.0 / jnp.sqrt(D_IN)
    bound2 = 1.0 / jnp.sqrt(D_HID)
    # Stored as (in, out): transposed relative to PyTorch's (out, in) weight.
    w1 = jax.random.uniform(k1, (D_IN, D_HID), jnp.float32, -bound1, bound1)
    b1 = jax.random.uniform(k2, (D_HID,), jnp.float32, -bound1, bound1)
    w2 = jax.random.uniform(k3, (D_HID, D_OUT), jnp.float32, -bound2, bound2)
    b2 = jax.random.uniform(k4, (D_OUT,), jnp.float32, -bound2, bound2)
    return w1, b1, w2, b2


if __name__ == "__main__":
    key = jax.random.PRNGKey(0)
    kx, kp, kx2 = jax.random.split(key, 3)
    w1, b1, w2, b2 = init_params(kp)

    def ref_bf16(xi):
        # Same numerics as the kernel: bf16 operands, f32 accumulation/bias.
        h = jnp.dot(xi.astype(jnp.bfloat16), w1.astype(jnp.bfloat16),
                    preferred_element_type=jnp.float32) + b1
        y = jnp.dot(h.astype(jnp.bfloat16), w2.astype(jnp.bfloat16),
                    preferred_element_type=jnp.float32) + b2
        return y

    # Small batch -> gridless single-block path.
    B = 8
    x = jax.random.normal(kx, (B, D_IN), jnp.float32)
    out = jax.block_until_ready(test_model_forward(x, w1, b1, w2, b2))
    assert out.shape == (B, D_OUT)
    assert out.dtype == jnp.float32
    assert jnp.allclose(out, ref_bf16(x), atol=5e-3, rtol=5e-3)
    # Loose sanity check against the exact f32 PyTorch-equivalent math.
    ref_f32 = (x @ w1 + b1) @ w2 + b2
    assert jnp.allclose(out, ref_f32, atol=1e-1, rtol=1e-1)

    # Larger batch -> tiled / megacore path (tb=512, 2 parallel grid steps).
    B2 = 1024
    x2 = jax.random.normal(kx2, (B2, D_IN), jnp.float32)
    out2 = jax.block_until_ready(test_model_forward(x2, w1, b1, w2, b2))
    assert out2.shape == (B2, D_OUT)
    assert jnp.allclose(out2, ref_bf16(x2), atol=5e-3, rtol=5e-3)

    print("KERNEL_OK")
</pallas_src>

<mosaic_0001>
module attributes {stable_mosaic.version = 11 : i64} {
  func.func @mlp_kernel(%arg0: memref<8x128xf32, #tpu.memory_space<vmem>>, %arg1: memref<128x256xbf16, #tpu.memory_space<vmem>>, %arg2: memref<1x256xf32, #tpu.memory_space<vmem>>, %arg3: memref<256x512xbf16, #tpu.memory_space<vmem>>, %arg4: memref<1x512xf32, #tpu.memory_space<vmem>>, %arg5: memref<8x512xf32, #tpu.memory_space<vmem>>) attributes {dimension_semantics = [], scalar_prefetch = 0 : i64, scratch_operands = 0 : i64, tpu.core_type = #tpu.core_type<tc>} {
    %c0 = arith.constant 0 : index
    %c0_0 = arith.constant 0 : index
    %0 = vector.load %arg0[%c0, %c0_0] : memref<8x128xf32, #tpu.memory_space<vmem>>, vector<8x128xf32>
    %1 = arith.truncf %0 : vector<8x128xf32> to vector<8x128xbf16>
    %c0_1 = arith.constant 0 : index
    %c0_2 = arith.constant 0 : index
    %2 = vector.load %arg1[%c0_1, %c0_2] : memref<128x256xbf16, #tpu.memory_space<vmem>>, vector<128x256xbf16>
    %cst = arith.constant dense<0.000000e+00> : vector<8x256xf32>
    %3 = tpu.matmul %1, %2, %cst {dimension_numbers = #tpu.dot_dimension_numbers<[1], [0], [0], [1], [0, 0, 1, 1], [], []>} : vector<8x128xbf16>, vector<128x256xbf16>, vector<8x256xf32> -> vector<8x256xf32>
    %c0_3 = arith.constant 0 : index
    %c0_4 = arith.constant 0 : index
    %4 = vector.load %arg2[%c0_3, %c0_4] : memref<1x256xf32, #tpu.memory_space<vmem>>, vector<1x256xf32>
    %5 = vector.broadcast %4 : vector<1x256xf32> to vector<8x256xf32>
    %6 = arith.addf %3, %5 : vector<8x256xf32>
    %7 = arith.truncf %6 : vector<8x256xf32> to vector<8x256xbf16>
    %c0_5 = arith.constant 0 : index
    %c0_6 = arith.constant 0 : index
    %8 = vector.load %arg3[%c0_5, %c0_6] : memref<256x512xbf16, #tpu.memory_space<vmem>>, vector<256x512xbf16>
    %cst_7 = arith.constant dense<0.000000e+00> : vector<8x512xf32>
    %9 = tpu.matmul %7, %8, %cst_7 {dimension_numbers = #tpu.dot_dimension_numbers<[1], [0], [0], [1], [0, 0, 1, 1], [], []>} : vector<8x256xbf16>, vector<256x512xbf16>, vector<8x512xf32> -> vector<8x512xf32>
    %c0_8 = arith.constant 0 : index
    %c0_9 = arith.constant 0 : index
    %10 = vector.load %arg4[%c0_8, %c0_9] : memref<1x512xf32, #tpu.memory_space<vmem>>, vector<1x512xf32>
    %11 = vector.broadcast %10 : vector<1x512xf32> to vector<8x512xf32>
    %12 = arith.addf %9, %11 : vector<8x512xf32>
    %c0_10 = arith.constant 0 : index
    %c0_11 = arith.constant 0 : index
    %13 = vector.load %arg5[%c0_10, %c0_11] : memref<8x512xf32, #tpu.memory_space<vmem>>, vector<8x512xf32>
    tpu.vector_store %arg5[%c0_10, %c0_11], %12 {strides = array<i32>} : memref<8x512xf32, #tpu.memory_space<vmem>>, vector<8x512xf32>,
    return
  }
}

</mosaic_0001>

<bundles_post_ra>
// kernel: tpu_custom_call.1
= control target key start
LH: loop header
LB: loop body
LE: loop exit
PB: predicated region body
PF: predicated region fallthrough
CT: control target
= control target key end

     0   :  { %10 = vsyncpa [#allocation3], 0  ;;  %s1118_s0 = inlined_call_operand.hbm [shape: f32[8,128], index: 0, kind: input, shape index: {}]   ;;  %s1119_s1 = inlined_call_operand.hbm [shape: bf16[128,256], index: 1, kind: input, shape index: {}]   ;;  %s1120_s2 = inlined_call_operand.vmem [shape: f32[1,256], index: 2, kind: input, shape index: {}]   ;;  %s1121_s3 = inlined_call_operand.hbm [shape: bf16[256,512], index: 3, kind: input, shape index: {}]   ;;  %s1122_s4 = inlined_call_operand.vmem [shape: f32[1,512], index: 4, kind: input, shape index: {}]   ;;  %s1123_s5 = inlined_call_operand.hbm [shape: f32[8,512], index: 5, kind: output, shape index: {}]  }
   0x1   :  { %11 = vsyncpa [#allocation6], 0 }
   0x2   :  { %12 = vsyncpa [#allocation4], 0  ;;  %s1025_s18 = smov [#allocation5]   ;;  %s931_s22 = scalar_lea.hbm %s1119_s1, 2048 }
   0x3   :  { %s28_s19 = sshll.u32 %s1025_s18, 4  ;;  %p932_p0 = scmp.ne.s32.totalorder %s1119_s1, %s931_s22  ;;  %s29_s19 = int_to_ptr.vmem [resolvable:$true] %s28_s19 }
   0x4   :  { %p935_p1 = scmp.lt.u32.totalorder %s931_s22, %s1119_s1 }
   0x6   :  { %p937_p2 = pnand %p935_p1, %p932_p0 }
   0x8   :  { %940 = shalt.err (!%p937_p2)
}
   0x9   :  { %s941_s27 = scalar_lea.vmem %s29_s19, 2048  ;;  %p946_p4 = scmp.lt.s32.totalorder %s29_s19, %s29_s19 }
   0xa   :  { %p942_p3 = scmp.ne.s32.totalorder %s29_s19, %s941_s27  ;;  %p947_p5 = scmp.lt.s32.totalorder %s941_s27, %s941_s27 }
   0xc   :  { %p948_p6 = por %p947_p5, %p946_p4 }
   0xe   :  { %p949_p7 = pnand %p948_p6, %p942_p3 }
  0x10   :  { %952 = shalt.err (!%p949_p7)
}
  0x11   :  { %s1026_s28 = smov 128   ;;  %s1027_s29 = smov 8  }
  0x12   :  { %34 = dma.hbm_to_vmem [thread:$0]  %s1119_s1, 2048, %s29_s19, [#allocation6], %s1026_s28, %s1026_s28, %s1027_s29  }
  0x13   :  { %s1028_s7 = smov [#allocation2]   ;;  %s1029_s9 = smov [#allocation7]  }
  0x14   :  { %s19_s8 = sshll.u32 %s1028_s7, 4  ;;  %s42_s10 = sshll.u32 %s1029_s9, 4  ;;  %s20_s8 = int_to_ptr.vmem [resolvable:$true] %s19_s8  ;;  %s43_s10 = int_to_ptr.vmem [resolvable:$true] %s42_s10 }
  0x15   :  { %s953_s13 = scalar_lea.hbm %s1118_s0, 128 }
  0x16   :  { %p954_p8 = scmp.ne.s32.totalorder %s1118_s0, %s953_s13  ;;  %p957_p9 = scmp.lt.u32.totalorder %s953_s13, %s1118_s0 }
  0x18   :  { %p959_p10 = pnand %p957_p9, %p954_p8 }
  0x1a   :  { %962 = shalt.err (!%p959_p10)
}
  0x1b   :  { %s963_s1 = scalar_lea.vmem %s20_s8, 128  ;;  %p968_p12 = scmp.lt.s32.totalorder %s20_s8, %s20_s8 }
  0x1c   :  { %p964_p11 = scmp.ne.s32.totalorder %s20_s8, %s963_s1  ;;  %p969_p13 = scmp.lt.s32.totalorder %s963_s1, %s963_s1 }
  0x1e   :  { %p970_p0 = por %p969_p13, %p968_p12 }
  0x20   :  { %p971_p1 = pnand %p970_p0, %p964_p11 }
  0x22   :  { %974 = shalt.err (!%p971_p1)
}
  0x23   :  { %22 = dma.hbm_to_vmem [thread:$0]  %s1118_s0, 128, %s20_s8, [#allocation3]  }
  0x24   :  { %s975_s22 = scalar_lea.hbm %s1121_s3, 8192 }
  0x25   :  { %p976_p2 = scmp.ne.s32.totalorder %s1121_s3, %s975_s22  ;;  %p979_p3 = scmp.lt.u32.totalorder %s975_s22, %s1121_s3 }
  0x27   :  { %p981_p4 = pnand %p979_p3, %p976_p2 }
  0x29   :  { %984 = shalt.err (!%p981_p4)
}
  0x2a   :  { %s985_s27 = scalar_lea.vmem %s43_s10, 8192  ;;  %p990_p6 = scmp.lt.s32.totalorder %s43_s10, %s43_s10 }
  0x2b   :  { %p986_p5 = scmp.ne.s32.totalorder %s43_s10, %s985_s27  ;;  %p991_p7 = scmp.lt.s32.totalorder %s985_s27, %s985_s27 }
  0x2d   :  { %p992_p8 = por %p991_p7, %p990_p6 }
  0x2f   :  { %p993_p9 = pnand %p992_p8, %p986_p5 }
  0x31   :  { %996 = shalt.err (!%p993_p9)
}
  0x32   :  { %s1030_s0 = smov 256   ;;  %s1031_s28 = smov 16  }
  0x33   :  { %48 = dma.hbm_to_vmem [thread:$0]  %s1121_s3, 8192, %s43_s10, [#allocation6], %s1030_s0, %s1030_s0, %s1031_s28  }
  0x34   :  { %1019 = dma.done.wait [#allocation3], 128  }
  0x35   :  { %1020 = vsyncadd [#allocation3], 4294967168 }
  0x36   :  { %1021 = dma.done.wait [#allocation6], 10240  }
  0x37   :  { %1022 = vsyncadd [#allocation6], 4294957056  ;;  %v1032_v0 = vmov 0   ;;  %v811_v1 = vld [vmem:[#allocation5 + $0x4] ss:$8 sps:$4 sm:$0xff]   ;;  %v61_v26 = vld [vmem:[#allocation2] sm:$0xff] }
  0x38   :  { %203 = vmatprep.mubr.bf16.mxu0 %v1032_v0  ;;  %v813_v2 = vld [vmem:[#allocation5] ss:$8 sps:$4 sm:$0xff]   ;;  %171 = vmatprep.subr.bf16.mxu0 %v811_v1  ;;  %v814_v3 = vld [vmem:[#allocation5 + $0x14] ss:$8 sps:$4 sm:$0xff]   ;;  %v816_v4 = vld [vmem:[#allocation5 + $0x10] ss:$8 sps:$4 sm:$0xff]   ;;  %v62_v30 = vpack.c.bf16 %v61_v26, %v61_v26 }
  0x39   :  { %172 = vmatpush1.bf16.msra.mxu0 %v813_v2  ;;  %v817_v5 = vld [vmem:[#allocation5 + $0x24] ss:$8 sps:$4 sm:$0xff]   ;;  %v819_v6 = vld [vmem:[#allocation5 + $0x20] ss:$8 sps:$4 sm:$0xff]   ;;  %v820_v7 = vld [vmem:[#allocation5 + $0x34] ss:$8 sps:$4 sm:$0xff]  }
  0x3a   :  { %173 = vmatprep.subr.bf16.mxu0 %v814_v3  ;;  %v822_v8 = vld [vmem:[#allocation5 + $0x30] ss:$8 sps:$4 sm:$0xff]   ;;  %v835_v9 = vld [vmem:[#allocation7 + $0x4] ss:$16 sps:$4 sm:$0xff]   ;;  %v825_v13 = vld [vmem:[#allocation5 + $0x40] ss:$8 sps:$4 sm:$0xff]  }
  0x3b   :  { %v823_v10 = vld [vmem:[#allocation5 + $0x44] ss:$8 sps:$4 sm:$0xff]   ;;  %620 = vmatprep.subr.bf16.mxu1 %v835_v9  ;;  %v840_v11 = vld [vmem:[#allocation7] ss:$16 sps:$4 sm:$0xff]   ;;  %v826_v14 = vld [vmem:[#allocation5 + $0x54] ss:$8 sps:$4 sm:$0xff]  }
  0x3c   :  { %v841_v12 = vld [vmem:[#allocation7 + $0x24] ss:$16 sps:$4 sm:$0xff]   ;;  %621 = vmatpush1.bf16.msra.mxu1 %v840_v11  ;;  %v846_v15 = vld [vmem:[#allocation7 + $0x20] ss:$16 sps:$4 sm:$0xff]   ;;  %v839_v27 = vld [vmem:[#allocation7 + $0xc] ss:$16 sps:$4 sm:$0xff]  }
  0x3d   :  { %174 = vmatpush1.bf16.msra.mxu0 %v816_v4  ;;  %622 = vmatprep.subr.bf16.mxu1 %v841_v12  ;;  %v847_v16 = vld [vmem:[#allocation7 + $0x44] ss:$16 sps:$4 sm:$0xff]   ;;  %v828_v17 = vld [vmem:[#allocation5 + $0x50] ss:$8 sps:$4 sm:$0xff]   ;;  %v831_v21 = vld [vmem:[#allocation5 + $0x60] ss:$8 sps:$4 sm:$0xff]  }
  0x3e   :  { %175 = vmatprep.subr.bf16.mxu0 %v817_v5  ;;  %v829_v18 = vld [vmem:[#allocation5 + $0x64] ss:$8 sps:$4 sm:$0xff]   ;;  %v852_v19 = vld [vmem:[#allocation7 + $0x40] ss:$16 sps:$4 sm:$0xff]   ;;  %v832_v22 = vld [vmem:[#allocation5 + $0x74] ss:$8 sps:$4 sm:$0xff]  }
  0x3f   :  { %v853_v20 = vld [vmem:[#allocation7 + $0x64] ss:$16 sps:$4 sm:$0xff]   ;;  %v858_v23 = vld [vmem:[#allocation7 + $0x60] ss:$16 sps:$4 sm:$0xff]   ;;  %v837_v31 = vld [vmem:[#allocation7 + $0x8] ss:$16 sps:$4 sm:$0xff]  }
  0x40   :  { %623 = vmatpush1.bf16.msra.mxu1 %v846_v15  ;;  %v859_v24 = vld [vmem:[#allocation7 + $0x84] ss:$16 sps:$4 sm:$0xff]   ;;  %v834_v25 = vld [vmem:[#allocation5 + $0x70] ss:$8 sps:$4 sm:$0xff]   ;;  %v845_v32 = vld [vmem:[#allocation7 + $0x2c] ss:$16 sps:$4 sm:$0xff]  }
  0x41   :  { %176 = vmatpush1.bf16.msra.mxu0 %v819_v6  ;;  %624 = vmatprep.subr.bf16.mxu1 %v847_v16  ;;  %v864_v28 = vld [vmem:[#allocation7 + $0x80] ss:$16 sps:$4 sm:$0xff]   ;;  %v865_v29 = vld [vmem:[#allocation7 + $0xa4] ss:$16 sps:$4 sm:$0xff]   ;;  %v843_v35 = vld [vmem:[#allocation7 + $0x28] ss:$16 sps:$4 sm:$0xff]  }
  0x42   :  { %177 = vmatprep.subr.bf16.mxu0 %v820_v7  ;;  %v870_v33 = vld [vmem:[#allocation7 + $0xa0] ss:$16 sps:$4 sm:$0xff]   ;;  %v871_v34 = vld [vmem:[#allocation7 + $0xc4] ss:$16 sps:$4 sm:$0xff]   ;;  %v851_v36 = vld [vmem:[#allocation7 + $0x4c] ss:$16 sps:$4 sm:$0xff]  }
  0x43   :  { %v876_v37 = vld [vmem:[#allocation7 + $0xc0] ss:$16 sps:$4 sm:$0xff]   ;;  %v877_v38 = vld [vmem:[#allocation7 + $0xe4] ss:$16 sps:$4 sm:$0xff]   ;;  %v849_v39 = vld [vmem:[#allocation7 + $0x48] ss:$16 sps:$4 sm:$0xff]  }
  0x44   :  { %625 = vmatpush1.bf16.msra.mxu1 %v852_v19  ;;  %v857_v40 = vld [vmem:[#allocation7 + $0x6c] ss:$16 sps:$4 sm:$0xff]   ;;  %v882_v41 = vld [vmem:[#allocation7 + $0xe0] ss:$16 sps:$4 sm:$0xff]   ;;  %v883_v42 = vld [vmem:[#allocation7 + $0x104] ss:$16 sps:$4 sm:$0xff]   ;;  %v81_v19 = vlaneseq }
  0x45   :  { %178 = vmatpush1.bf16.msra.mxu0 %v822_v8  ;;  %626 = vmatprep.subr.bf16.mxu1 %v853_v20  ;;  %v855_v43 = vld [vmem:[#allocation7 + $0x68] ss:$16 sps:$4 sm:$0xff]   ;;  %v863_v44 = vld [vmem:[#allocation7 + $0x8c] ss:$16 sps:$4 sm:$0xff]   ;;  %v888_v45 = vld [vmem:[#allocation7 + $0x100] ss:$16 sps:$4 sm:$0xff]  }
  0x46   :  { %179 = vmatprep.subr.bf16.mxu0 %v823_v10  ;;  %v889_v46 = vld [vmem:[#allocation7 + $0x124] ss:$16 sps:$4 sm:$0xff]   ;;  %v861_v47 = vld [vmem:[#allocation7 + $0x88] ss:$16 sps:$4 sm:$0xff]   ;;  %v869_v48 = vld [vmem:[#allocation7 + $0xac] ss:$16 sps:$4 sm:$0xff]  }
  0x47   :  { %v894_v49 = vld [vmem:[#allocation7 + $0x120] ss:$16 sps:$4 sm:$0xff]   ;;  %v895_v50 = vld [vmem:[#allocation7 + $0x144] ss:$16 sps:$4 sm:$0xff]   ;;  %v867_v51 = vld [vmem:[#allocation7 + $0xa8] ss:$16 sps:$4 sm:$0xff]  }
  0x48   :  { %627 = vmatpush1.bf16.msra.mxu1 %v858_v23  ;;  %v900_v52 = vld [vmem:[#allocation7 + $0x140] ss:$16 sps:$4 sm:$0xff]   ;;  %v875_v53 = vld [vmem:[#allocation7 + $0xcc] ss:$16 sps:$4 sm:$0xff]   ;;  %v901_v54 = vld [vmem:[#allocation7 + $0x164] ss:$16 sps:$4 sm:$0xff]  }
  0x49   :  { %180 = vmatpush1.bf16.msra.mxu0 %v825_v13  ;;  %628 = vmatprep.subr.bf16.mxu1 %v859_v24  ;;  %v873_v55 = vld [vmem:[#allocation7 + $0xc8] ss:$16 sps:$4 sm:$0xff]   ;;  %v906_v56 = vld [vmem:[#allocation7 + $0x160] ss:$16 sps:$4 sm:$0xff]   ;;  %v881_v57 = vld [vmem:[#allocation7 + $0xec] ss:$16 sps:$4 sm:$0xff]  }
  0x4a   :  { %181 = vmatprep.subr.bf16.mxu0 %v826_v14  ;;  %v907_v58 = vld [vmem:[#allocation7 + $0x184] ss:$16 sps:$4 sm:$0xff]   ;;  %v879_v59 = vld [vmem:[#allocation7 + $0xe8] ss:$16 sps:$4 sm:$0xff]   ;;  %v912_v60 = vld [vmem:[#allocation7 + $0x180] ss:$16 sps:$4 sm:$0xff]  }
  0x4b   :  { %v887_v61 = vld [vmem:[#allocation7 + $0x10c] ss:$16 sps:$4 sm:$0xff]   ;;  %v913_v62 = vld [vmem:[#allocation7 + $0x1a4] ss:$16 sps:$4 sm:$0xff]   ;;  %v885_v63 = vld [vmem:[#allocation7 + $0x108] ss:$16 sps:$4 sm:$0xff]  }
  0x4c   :  { %629 = vmatpush1.bf16.msra.mxu1 %v864_v28  ;;  %v918_v0 = vld [vmem:[#allocation7 + $0x1a0] ss:$16 sps:$4 sm:$0xff]   ;;  %v893_v1 = vld [vmem:[#allocation7 + $0x12c] ss:$16 sps:$4 sm:$0xff]   ;;  %v919_v2 = vld [vmem:[#allocation7 + $0x1c4] ss:$16 sps:$4 sm:$0xff]  }
  0x4d   :  { %182 = vmatpush1.bf16.msra.mxu0 %v828_v17  ;;  %630 = vmatprep.subr.bf16.mxu1 %v865_v29  ;;  %v891_v3 = vld [vmem:[#allocation7 + $0x128] ss:$16 sps:$4 sm:$0xff]   ;;  %v899_v4 = vld [vmem:[#allocation7 + $0x14c] ss:$16 sps:$4 sm:$0xff]   ;;  %v924_v14 = vld [vmem:[#allocation7 + $0x1c0] ss:$16 sps:$4 sm:$0xff]  }
  0x4e   :  { %183 = vmatprep.subr.bf16.mxu0 %v829_v18  ;;  %v897_v5 = vld [vmem:[#allocation7 + $0x148] ss:$16 sps:$4 sm:$0xff]   ;;  %v905_v6 = vld [vmem:[#allocation7 + $0x16c] ss:$16 sps:$4 sm:$0xff]   ;;  %v925_v15 = vld [vmem:[#allocation7 + $0x1e4] ss:$16 sps:$4 sm:$0xff]  }
  0x4f   :  { %v903_v7 = vld [vmem:[#allocation7 + $0x168] ss:$16 sps:$4 sm:$0xff]   ;;  %v911_v8 = vld [vmem:[#allocation7 + $0x18c] ss:$16 sps:$4 sm:$0xff]   ;;  %v930_v18 = vld [vmem:[#allocation7 + $0x1e0] ss:$16 sps:$4 sm:$0xff]  }
  0x50   :  { %631 = vmatpush1.bf16.msra.mxu1 %v870_v33  ;;  %v909_v9 = vld [vmem:[#allocation7 + $0x188] ss:$16 sps:$4 sm:$0xff]   ;;  %v917_v10 = vld [vmem:[#allocation7 + $0x1ac] ss:$16 sps:$4 sm:$0xff]   ;;  %v82_v20 = vshrl.u32 %v81_v19, 7 }
  0x51   :  { %184 = vmatpush1.bf16.msra.mxu0 %v831_v21  ;;  %632 = vmatprep.subr.bf16.mxu1 %v871_v34  ;;  %v915_v11 = vld [vmem:[#allocation7 + $0x1a8] ss:$16 sps:$4 sm:$0xff]   ;;  %v923_v12 = vld [vmem:[#allocation7 + $0x1cc] ss:$16 sps:$4 sm:$0xff]  }
  0x52   :  { %185 = vmatprep.subr.bf16.mxu0 %v832_v22  ;;  %v921_v13 = vld [vmem:[#allocation7 + $0x1c8] ss:$16 sps:$4 sm:$0xff]   ;;  %v929_v16 = vld [vmem:[#allocation7 + $0x1ec] ss:$16 sps:$4 sm:$0xff]   ;;  %v83_v21 = vsub.s32 0, %v82_v20  ;;  %v87_v23 = vsub.s32 1, %v82_v20 }
  0x53   :  { %v927_v17 = vld [vmem:[#allocation7 + $0x1e8] ss:$16 sps:$4 sm:$0xff]   ;;  %v290_v34 = vsub.s32 2, %v82_v20 }
  0x54   :  { %633 = vmatpush1.bf16.msra.mxu1 %v876_v37  ;;  %v79_v22 = vld [vmem:[%s1120_s2] sm:$0x3]  ;;  %s1033_s2 = smov [#allocation8]  }
  0x55   :  { %186 = vmatpush1.bf16.msra.mxu0 %v834_v25  ;;  %634 = vmatprep.subr.bf16.mxu1 %v877_v38  ;;  %v84_v24 = vrot.slane %v79_v22, %v83_v21  ;;  %v88_v25 = vrot.slane %v79_v22, %v87_v23  ;;  %s712_s9 = sshll.u32 %s1033_s2, 4  ;;  %s713_s9 = int_to_ptr.vmem [resolvable:$true] %s712_s9 }
  0x56   :  { %661 = vmatprep.subr.bf16.mxu0 %v839_v27  ;;  %p1002_p11 = scmp.lt.s32.totalorder %s713_s9, %s713_s9 }
  0x58   :  { %204 = vmatmul.mubr.bf16.vlgmr.msra.gmra.mrb[0].mxu0 %v62_v30  ;;  %635 = vmatpush1.bf16.msra.mxu1 %v882_v41 }
  0x59   :  { %662 = vmatpush1.bf16.msra.mxu0 %v837_v31  ;;  %636 = vmatprep.subr.bf16.mxu1 %v883_v42 }
  0x5a   :  { %663 = vmatprep.subr.bf16.mxu0 %v845_v32 }
  0x5c   :  { %637 = vmatpush1.bf16.msra.mxu1 %v888_v45 }
  0x5d   :  { %664 = vmatpush1.bf16.msra.mxu0 %v843_v35  ;;  %638 = vmatprep.subr.bf16.mxu1 %v889_v46  ;;  %v278_v35 = vld [vmem:[%s1122_s4] sm:$0xf]  ;;  %s997_s4 = scalar_lea.vmem %s713_s9, 512 }
  0x5e   :  { %665 = vmatprep.subr.bf16.mxu0 %v851_v36  ;;  %v294_v36 = vsub.s32 3, %v82_v20  ;;  %v283_v37 = vrot.slane %v278_v35, %v83_v21  ;;  %v291_v38 = vrot.slane %v278_v35, %v290_v34  ;;  %p998_p10 = scmp.ne.s32.totalorder %s713_s9, %s997_s4  ;;  %p1003_p12 = scmp.lt.s32.totalorder %s997_s4, %s997_s4 }
  0x60   :  { %639 = vmatpush1.bf16.msra.mxu1 %v894_v49  ;;  %p1004_p13 = por %p1003_p12, %p1002_p11 }
  0x61   :  { %666 = vmatpush1.bf16.msra.mxu0 %v849_v39  ;;  %640 = vmatprep.subr.bf16.mxu1 %v895_v50  ;;  %v287_v39 = vrot.slane %v278_v35, %v87_v23 }
  0x62   :  { %667 = vmatprep.subr.bf16.mxu0 %v857_v40  ;;  %v295_v40 = vrot.slane %v278_v35, %v294_v36  ;;  %p1005_p0 = pnand %p1004_p13, %p998_p10 }
  0x64   :  { %641 = vmatpush1.bf16.msra.mxu1 %v900_v52 }
  0x65   :  { %668 = vmatpush1.bf16.msra.mxu0 %v855_v43  ;;  %642 = vmatprep.subr.bf16.mxu1 %v901_v54 }
  0x66   :  { %669 = vmatprep.subr.bf16.mxu0 %v863_v44 }
  0x68   :  { %643 = vmatpush1.bf16.msra.mxu1 %v906_v56 }
  0x69   :  { %670 = vmatpush1.bf16.msra.mxu0 %v861_v47  ;;  %644 = vmatprep.subr.bf16.mxu1 %v907_v58 }
  0x6a   :  { %671 = vmatprep.subr.bf16.mxu0 %v869_v48 }
  0x6c   :  { %645 = vmatpush1.bf16.msra.mxu1 %v912_v60 }
  0x6d   :  { %672 = vmatpush1.bf16.msra.mxu0 %v867_v51  ;;  %646 = vmatprep.subr.bf16.mxu1 %v913_v62 }
  0x6e   :  { %673 = vmatprep.subr.bf16.mxu0 %v875_v53 }
  0x70   :  { %647 = vmatpush1.bf16.msra.mxu1 %v918_v0 }
  0x71   :  { %674 = vmatpush1.bf16.msra.mxu0 %v873_v55  ;;  %648 = vmatprep.subr.bf16.mxu1 %v919_v2 }
  0x72   :  { %675 = vmatprep.subr.bf16.mxu0 %v881_v57 }
  0x74   :  { %649 = vmatpush1.bf16.msra.mxu1 %v924_v14 }
  0x75   :  { %676 = vmatpush1.bf16.msra.mxu0 %v879_v59  ;;  %650 = vmatprep.subr.bf16.mxu1 %v925_v15 }
  0x76   :  { %677 = vmatprep.subr.bf16.mxu0 %v887_v61 }
  0x78   :  { %651 = vmatpush1.bf16.msra.mxu1 %v930_v18 }
  0x79   :  { %678 = vmatpush1.bf16.msra.mxu0 %v885_v63 }
  0x7a   :  { %679 = vmatprep.subr.bf16.mxu0 %v893_v1 }
  0x7d   :  { %680 = vmatpush1.bf16.msra.mxu0 %v891_v3 }
  0x7e   :  { %681 = vmatprep.subr.bf16.mxu0 %v899_v4 }
  0x81   :  { %682 = vmatpush1.bf16.msra.mxu0 %v897_v5 }
  0x82   :  { %683 = vmatprep.subr.bf16.mxu0 %v905_v6 }
  0x85   :  { %684 = vmatpush1.bf16.msra.mxu0 %v903_v7 }
  0x86   :  { %685 = vmatprep.subr.bf16.mxu0 %v911_v8 }
  0x89   :  { %686 = vmatpush1.bf16.msra.mxu0 %v909_v9 }
  0x8a   :  { %687 = vmatprep.subr.bf16.mxu0 %v917_v10 }
  0x8d   :  { %688 = vmatpush1.bf16.msra.mxu0 %v915_v11 }
  0x8e   :  { %689 = vmatprep.subr.bf16.mxu0 %v923_v12 }
  0x91   :  { %690 = vmatpush1.bf16.msra.mxu0 %v921_v13 }
  0x92   :  { %691 = vmatprep.subr.bf16.mxu0 %v929_v16 }
  0x95   :  { %692 = vmatpush1.bf16.msra.mxu0 %v927_v17 }
 0x12b   :  { %v205_v26 = vpop.f32.mrb[0].mxu0 }
 0x12c   :  { %v206_v27 = vadd.f32 %v205_v26, %v84_v24  ;;  %v207_v28 = vpop.f32.mrb[1].mxu0 }
 0x12d   :  { %v208_v29 = vadd.f32 %v207_v28, %v88_v25  ;;  %v209_v30 = vpop.f32.mrb[2].mxu0 }
 0x12e   :  { %v210_v31 = vpop.f32.mrb[3].mxu0  ;;  %v212_v33 = vpack.c.bf16 %v206_v27, %v206_v27 }
 0x12f   :  { %v213_v32 = vpack.c.bf16 %v208_v29, %v208_v29 }
 0x131   :  { %652 = vmatprep.mubr.bf16.mxu1 %v213_v32  ;;  %693 = vmatprep.mubr.bf16.mxu0 %v213_v32 }
 0x132   :  { %653 = vmatmul.mubr.bf16.vlgmr.msra.gmra.mrb[0].mxu1 %v212_v33  ;;  %694 = vmatmul.mubr.bf16.vlgmr.msra.gmra.mrb[4].mxu0 %v212_v33 }
 0x205   :  { %v654_v41 = vpop.f32.mrb[0].mxu1  ;;  %v695_v42 = vpop.f32.mrb[4].mxu0 }
 0x206   :  { %v655_v43 = vadd.f32 %v654_v41, %v283_v37  ;;  %v696_v44 = vadd.f32 %v695_v42, %v291_v38  ;;  %v656_v45 = vpop.f32.mrb[1].mxu1  ;;  %v697_v46 = vpop.f32.mrb[5].mxu0 }
 0x207   :  { %v657_v47 = vadd.f32 %v656_v45, %v287_v39  ;;  %v698_v48 = vadd.f32 %v697_v46, %v295_v40  ;;  %v658_v49 = vpop.f32.mrb[2].mxu1  ;;  %v699_v50 = vpop.f32.mrb[6].mxu0 }
 0x208   :  { %702 = vst [vmem:[#allocation8] sm:$0xff] %v655_v43  ;;  %704 = vst [vmem:[#allocation8 + $0x10] sm:$0xff] %v696_v44  ;;  %v659_v51 = vpop.f32.mrb[3].mxu1  ;;  %v700_v52 = vpop.f32.mrb[7].mxu0 }
 0x209   :  { %703 = vst [vmem:[#allocation8 + $0x8] sm:$0xff] %v657_v47  ;;  %705 = vst [vmem:[#allocation8 + $0x18] sm:$0xff] %v698_v48 }
 0x20a   :  { %1008 = shalt.err (!%p1005_p0)
}
 0x20b   :  { %s1009_s12 = scalar_lea.hbm %s1123_s5, 512 }
 0x20c   :  { %p1010_p1 = scmp.ne.s32.totalorder %s1123_s5, %s1009_s12  ;;  %p1013_p2 = scmp.lt.u32.totalorder %s1009_s12, %s1123_s5 }
 0x20e   :  { %p1015_p3 = pnand %p1013_p2, %p1010_p1 }
 0x210   :  { %1018 = shalt.err (!%p1015_p3)
}
 0x211   :  { %715 = dma.vmem_to_hbm [thread:$0]  %s713_s9, 512, %s1123_s5, [#allocation4]  }
 0x212   :  { %1023 = dma.done.wait [#allocation4], 512  }
 0x213   :  { %1024 = vsyncadd [#allocation4], 4294966784 }
 0x214   :  { %719 = vsyncpa [#allocation3], 1 }
 0x215   :  { %720 = vsyncpa [#allocation6], 1 }
 0x216   :  { %721 = vsyncpa [#allocation4], 1 }

</bundles_post_ra>
